<compile_context>
chip_gen: v7x
topology: tpu7x:2x2x1
jax: 0.10.0
libtpu: 0.0.40
codegen_flags: <defaults>
</compile_context>

<pallas_src>
import functools

import jax
import jax.numpy as jnp
from jax import lax
from jax.experimental import pallas as pl
from jax.experimental.pallas import tpu as pltpu


KSIZE = 8
STRIDE = 4
PAD = (KSIZE + (KSIZE % 2) - STRIDE) // 2      # = 2  (EasyConv2d 'same')
PHASES = STRIDE                                 # 4 output phases per spatial axis
TAPS = KSIZE // STRIDE + 1                      # 3x3 gathered input neighborhood


# ---------------------------------------------------------------------------
# Pallas kernels: fused  (W @ A) + bias -> PReLU  [-> +/- residual]
#   W : (R, K) bf16    A : (K, tm) bf16    bias : (R, 1) f32    out : (R, tm) f32
#   The minor (lane) dim of A / residual / out is the flattened spatial dim,
#   so every vector store is lane-dense.
# ---------------------------------------------------------------------------
def _mm_bias_prelu_kernel(w_ref, a_ref, b_ref, alpha_ref, o_ref):
    acc = jnp.dot(w_ref[...], a_ref[...], preferred_element_type=jnp.float32)
    acc = acc + b_ref[...]
    alpha = alpha_ref[0, 0]
    o_ref[...] = jnp.where(acc >= 0.0, acc, alpha * acc).astype(o_ref.dtype)


def _mm_bias_prelu_res_kernel(res_add, w_ref, a_ref, b_ref, alpha_ref, r_ref,
                              o_ref):
    acc = jnp.dot(w_ref[...], a_ref[...], preferred_element_type=jnp.float32)
    acc = acc + b_ref[...]
    alpha = alpha_ref[0, 0]
    acc = jnp.where(acc >= 0.0, acc, alpha * acc)
    if res_add:                      # static python flag (trace-time)
        acc = acc + r_ref[...]
    else:
        acc = acc - r_ref[...]
    o_ref[...] = acc.astype(o_ref.dtype)


def _round_up(v, m):
    return (v + m - 1) // m * m


def fused_matmul_bias_prelu(w_t, a_t, bias, alpha, residual=None, *,
                            res_add=True, tm_max=512):
    """out[r, m] = PReLU(sum_k w_t[r,k]*a_t[k,m] + bias[r]) (+/- residual[r,m]).

    w_t / a_t are cast to bf16 (f32 MXU accumulation); bias / residual / out
    stay f32.  M (the flattened spatial dim) lives in the lane dimension.
    """
    R, K = w_t.shape
    Kp = _round_up(K, 128)                 # keep the MXU contraction tile-aligned
    if Kp != K:
        w_t = jnp.pad(w_t, ((0, 0), (0, Kp - K)))
        a_t = jnp.pad(a_t, ((0, Kp - K), (0, 0)))
    K = Kp
    M = a_t.shape[1]

    # Tile over M (lane dim).  Weights / bias stay resident across the grid.
    if M % 128 == 0:
        tm = min(tm_max, M)
    else:
        tm = M                              # full-extent block for tiny inputs
    grid = (pl.cdiv(M, tm),)

    w_t = w_t.astype(jnp.bfloat16)
    a_t = a_t.astype(jnp.bfloat16)
    bias2 = jnp.asarray(bias, jnp.float32).reshape(R, 1)
    alpha2 = jnp.asarray(alpha, jnp.float32).reshape(1, 1)

    in_specs = [
        pl.BlockSpec((R, K), lambda i: (0, 0)),                # W (resident)
        pl.BlockSpec((K, tm), lambda i: (0, i)),               # A tile
        pl.BlockSpec((R, 1), lambda i: (0, 0)),                # bias
        pl.BlockSpec(memory_space=pltpu.MemorySpace.SMEM),     # PReLU alpha
    ]
    args = [w_t, a_t, bias2, alpha2]
    if residual is None:
        kernel = _mm_bias_prelu_kernel
    else:
        in_specs.append(pl.BlockSpec((R, tm), lambda i: (0, i)))   # residual tile
        args.append(residual.astype(jnp.float32))
        kernel = functools.partial(_mm_bias_prelu_res_kernel, res_add)

    return pl.pallas_call(
        kernel,
        out_shape=jax.ShapeDtypeStruct((R, M), jnp.float32),
        grid_spec=pltpu.PrefetchScalarGridSpec(
            num_scalar_prefetch=0,
            grid=grid,
            in_specs=in_specs,
            out_specs=pl.BlockSpec((R, tm), lambda i: (0, i)),
        ),
        compiler_params=pltpu.CompilerParams(
            dimension_semantics=("parallel",),
            vmem_limit_bytes=32 * 1024 * 1024,   # explicit budget, fits v7x 64 MiB
        ),
    )(*args)


# ---------------------------------------------------------------------------
# Phase (sub-pixel) decomposition of ConvTranspose2d(k=8, s=4, p=2)
# ---------------------------------------------------------------------------
# (phase, local-tap) -> kernel index of the original 8x8 kernel; -1 = no tap.
_PHASE_KMAP = ((6, 2, -1), (7, 3, -1), (-1, 4, 0), (-1, 5, 1))


def _phase_weight(w):
    """ConvTranspose2d weight (Cin, Cout, 8, 8) -> (16*Cout, 9*Cin) phase matrix."""
    cin, cout, _, _ = w.shape
    wt = jnp.zeros((PHASES, PHASES, cout, TAPS, TAPS, cin), w.dtype)
    for ph in range(PHASES):
        for dy in range(TAPS):
            kh = _PHASE_KMAP[ph][dy]
            if kh < 0:
                continue
            for pw in range(PHASES):
                for dx in range(TAPS):
                    kw = _PHASE_KMAP[pw][dx]
                    if kw < 0:
                        continue
                    wt = wt.at[ph, pw, :, dy, dx, :].set(w[:, :, kh, kw].T)
    return wt.reshape(PHASES * PHASES * cout, TAPS * TAPS * cin)


def _phase_patches(x):
    """x: (C, N, H, W) -> (9*C, N*H*W): 3x3 zero-padded neighborhoods,
    spatial flattened into the minor (lane) dim."""
    # TODO(synk): at production sizes, fuse this gather into the Pallas kernel
    # (overlapping-window DMA) instead of materializing the im2col matrix.
    c, n, h, w = x.shape
    xp = jnp.pad(x, ((0, 0), (0, 0), (1, 1), (1, 1)))
    slabs = [xp[:, :, dy:dy + h, dx:dx + w]
             for dy in range(TAPS) for dx in range(TAPS)]
    return jnp.stack(slabs, axis=0).reshape(TAPS * TAPS * c, n * h * w)


def _strided_patches(x, k, stride, pad):
    """x: (C, N, H, W) -> (k*k*C, N*Ho*Wo) im2col for a strided conv."""
    c, n, h, w = x.shape
    xp = jnp.pad(x, ((0, 0), (0, 0), (pad, pad), (pad, pad)))
    ho = (h + 2 * pad - k) // stride + 1
    wo = (w + 2 * pad - k) // stride + 1
    slabs = [xp[:, :, kh:kh + stride * (ho - 1) + 1:stride,
                kw:kw + stride * (wo - 1) + 1:stride]
             for kh in range(k) for kw in range(k)]
    return jnp.stack(slabs, axis=0).reshape(k * k * c, n * ho * wo), ho, wo


def _phase_to_spatial(o_phase, cout, n, h, w):
    """(16*Cout, N*H*W) phase layout -> (Cout, N, 4H, 4W) (pixel shuffle)."""
    o = o_phase.reshape(PHASES, PHASES, cout, n, h, w)
    o = o.transpose(2, 3, 4, 0, 5, 1)          # (Cout, N, H, ph, W, pw)
    return o.reshape(cout, n, PHASES * h, PHASES * w)


# ---------------------------------------------------------------------------
# UpBlock forward
# ---------------------------------------------------------------------------
def up_block(x, p):
    """x: (N, C, H, W) float32 -> (N, C, 4H, 4W) float32."""
    n, c, h, w = x.shape
    xc = x.transpose(1, 0, 2, 3)                               # internal (C,N,H,W)
    m = n * h * w

    # up_conv1: transposed conv (phase-decomposed) + PReLU
    h0_phase = fused_matmul_bias_prelu(
        _phase_weight(p["w1"]), _phase_patches(xc),
        jnp.tile(p["b1"], PHASES * PHASES), p["a1"])            # (16C, M)
    h0 = _phase_to_spatial(h0_phase, c, n, h, w)                # (C, N, 4H, 4W)

    # up_conv2: strided conv + PReLU, fused "- x" residual
    a2, ho2, wo2 = _strided_patches(h0, KSIZE, STRIDE, PAD)
    assert (ho2, wo2) == (h, w)
    w2_t = p["w2"].transpose(0, 2, 3, 1).reshape(c, KSIZE * KSIZE * c)
    l0_minus_x = fused_matmul_bias_prelu(
        w2_t, a2, p["b2"], p["a2"],
        residual=xc.reshape(c, m), res_add=False)               # (C, M) = l0 - x

    # up_conv3: transposed conv (phase-decomposed) + PReLU, fused "+ h0"
    out_phase = fused_matmul_bias_prelu(
        _phase_weight(p["w3"]),
        _phase_patches(l0_minus_x.reshape(c, n, h, w)),
        jnp.tile(p["b3"], PHASES * PHASES), p["a3"],
        residual=h0_phase, res_add=True)                        # (16C, M)
    out = _phase_to_spatial(out_phase, c, n, h, w)              # (C, N, 4H, 4W)
    return out.transpose(1, 0, 2, 3)                            # back to NCHW


# ---------------------------------------------------------------------------
# Pure-JAX references for verification
# ---------------------------------------------------------------------------
def _prelu(v, a):
    return jnp.where(v >= 0, v, a * v)


def _ref_conv(x, w, b, stride, padding, prefer=None):
    y = lax.conv_general_dilated(
        x, w, (stride, stride), [(padding, padding)] * 2,
        dimension_numbers=("NCHW", "OIHW", "NCHW"),
        preferred_element_type=prefer)
    return y + b.reshape(1, -1, 1, 1)


def _ref_convT(x, w, b, stride, padding, prefer=None):
    k = w.shape[-1]
    wf = jnp.flip(w, (2, 3)).transpose(1, 0, 2, 3)
    y = lax.conv_general_dilated(
        x, wf, (1, 1), [(k - 1 - padding, k - 1 - padding)] * 2,
        lhs_dilation=(stride, stride),
        dimension_numbers=("NCHW", "OIHW", "NCHW"),
        preferred_element_type=prefer)
    return y + b.reshape(1, -1, 1, 1)


def up_block_ref_f32(x, p):
    """True float32 module semantics."""
    h0 = _prelu(_ref_convT(x, p["w1"], p["b1"], STRIDE, PAD), p["a1"])
    l0 = _prelu(_ref_conv(h0, p["w2"], p["b2"], STRIDE, PAD), p["a2"])
    h1 = _prelu(_ref_convT(l0 - x, p["w3"], p["b3"], STRIDE, PAD), p["a3"])
    return h1 + h0


def up_block_ref_bf16(x, p):
    """Reference that rounds matmul operands to bf16 at the same points as the
    Pallas path (f32 accumulation) -> tight structural check."""
    bf, f32 = jnp.bfloat16, jnp.float32
    h0 = _prelu(_ref_convT(x.astype(bf), p["w1"].astype(bf), p["b1"],
                           STRIDE, PAD, prefer=f32), p["a1"])
    l0 = _prelu(_ref_conv(h0.astype(bf), p["w2"].astype(bf), p["b2"],
                          STRIDE, PAD, prefer=f32), p["a2"])
    d = l0 - x
    h1 = _prelu(_ref_convT(d.astype(bf), p["w3"].astype(bf), p["b3"],
                           STRIDE, PAD, prefer=f32), p["a3"])
    return h1 + h0


# ---------------------------------------------------------------------------
if __name__ == "__main__":
    C = 4                        # num_filter
    N, H, W = 2, 8, 8            # small deterministic input
    key = jax.random.PRNGKey(0)
    k1, k2, k3, k4, k5, k6, kx = jax.random.split(key, 7)

    bound = 1.0 / float(C * KSIZE * KSIZE) ** 0.5
    params = {
        # ConvTranspose2d weight layout: (in, out, kh, kw)
        "w1": jax.random.uniform(k1, (C, C, KSIZE, KSIZE), jnp.float32, -bound, bound),
        "b1": jax.random.uniform(k2, (C,), jnp.float32, -bound, bound),
        # Conv2d weight layout: (out, in, kh, kw)
        "w2": jax.random.uniform(k3, (C, C, KSIZE, KSIZE), jnp.float32, -bound, bound),
        "b2": jax.random.uniform(k4, (C,), jnp.float32, -bound, bound),
        "w3": jax.random.uniform(k5, (C, C, KSIZE, KSIZE), jnp.float32, -bound, bound),
        "b3": jax.random.uniform(k6, (C,), jnp.float32, -bound, bound),
        # PReLU single shared parameter (PyTorch default init 0.25)
        "a1": jnp.float32(0.25),
        "a2": jnp.float32(0.25),
        "a3": jnp.float32(0.25),
    }

    x = jax.random.normal(kx, (N, C, H, W), jnp.float32)

    out = jax.block_until_ready(jax.jit(up_block)(x, params))
    assert out.shape == (N, C, H * STRIDE, W * STRIDE), out.shape

    # Tight check vs a reference with identical bf16 operand rounding
    # (catches any structural / phase-mapping error).
    ref_bf16 = jax.block_until_ready(jax.jit(up_block_ref_bf16)(x, params))
    err_bf16 = float(jnp.max(jnp.abs(out - ref_bf16)))
    assert jnp.allclose(out, ref_bf16, rtol=5e-3, atol=5e-3), err_bf16

    # Loose check vs the true float32 module semantics (difference is only the
    # intentional bf16 rounding of the matmul operands).
    ref_f32 = jax.block_until_ready(jax.jit(up_block_ref_f32)(x, params))
    err_f32 = float(jnp.max(jnp.abs(out - ref_f32)))
    assert jnp.allclose(out, ref_f32, rtol=5e-2, atol=5e-2), err_f32

    print("KERNEL_OK")
</pallas_src>

<mosaic_0001>
module attributes {stable_mosaic.version = 11 : i64} {
  func.func @_mm_bias_prelu_kernel(%arg0: i32, %arg1: memref<64x128xbf16, #tpu.memory_space<vmem>>, %arg2: memref<128x128xbf16, #tpu.memory_space<vmem>>, %arg3: memref<64x1xf32, #tpu.memory_space<vmem>>, %arg4: memref<1x1xf32, #tpu.memory_space<smem>>, %arg5: memref<64x128xf32, #tpu.memory_space<vmem>>) attributes {dimension_semantics = [#tpu.dimension_semantics<parallel>], iteration_bounds = array<i64: 1>, scalar_prefetch = 0 : i64, scratch_operands = 0 : i64, tpu.core_type = #tpu.core_type<tc>, window_params = [{pipeline_mode = #tpu.pipeline_mode<synchronous>, transform_indices = @transform_0, window_bounds = array<i64: 64, 128>}, {transform_indices = @transform_1, window_bounds = array<i64: 128, 128>}, {pipeline_mode = #tpu.pipeline_mode<synchronous>, transform_indices = @transform_2, window_bounds = array<i64: 64, 1>}, {transform_indices = @transform_3, window_bounds = array<i64: 1, 1>}, {transform_indices = @transform_4, window_bounds = array<i64: 64, 128>}]} {
    %c0 = arith.constant 0 : index
    %c0_0 = arith.constant 0 : index
    %0 = vector.load %arg1[%c0, %c0_0] : memref<64x128xbf16, #tpu.memory_space<vmem>>, vector<64x128xbf16>
    %c0_1 = arith.constant 0 : index
    %c0_2 = arith.constant 0 : index
    %1 = vector.load %arg2[%c0_1, %c0_2] : memref<128x128xbf16, #tpu.memory_space<vmem>>, vector<128x128xbf16>
    %cst = arith.constant dense<0.000000e+00> : vector<64x128xf32>
    %2 = tpu.matmul %0, %1, %cst {dimension_numbers = #tpu.dot_dimension_numbers<[1], [0], [0], [1], [0, 0, 1, 1], [], []>} : vector<64x128xbf16>, vector<128x128xbf16>, vector<64x128xf32> -> vector<64x128xf32>
    %c0_3 = arith.constant 0 : index
    %c0_4 = arith.constant 0 : index
    %3 = vector.load %arg3[%c0_3, %c0_4] : memref<64x1xf32, #tpu.memory_space<vmem>>, vector<64x1xf32>
    %4 = vector.broadcast %3 : vector<64x1xf32> to vector<64x128xf32>
    %5 = arith.addf %2, %4 : vector<64x128xf32>
    %c0_5 = arith.constant 0 : index
    %c0_6 = arith.constant 0 : index
    %6 = memref.load %arg4[%c0_5, %c0_6] : memref<1x1xf32, #tpu.memory_space<smem>>
    %cst_7 = arith.constant 0.000000e+00 : f32
    %7 = vector.broadcast %cst_7 : f32 to vector<64x128xf32>
    %8 = arith.cmpf oge, %5, %7 : vector<64x128xf32>
    %9 = vector.broadcast %6 : f32 to vector<64x128xf32>
    %10 = arith.mulf %9, %5 : vector<64x128xf32>
    %11 = arith.select %8, %5, %10 : vector<64x128xi1>, vector<64x128xf32>
    %c0_8 = arith.constant 0 : index
    %c0_9 = arith.constant 0 : index
    %12 = vector.load %arg5[%c0_8, %c0_9] : memref<64x128xf32, #tpu.memory_space<vmem>>, vector<64x128xf32>
    tpu.vector_store %arg5[%c0_8, %c0_9], %11 {strides = array<i32>} : memref<64x128xf32, #tpu.memory_space<vmem>>, vector<64x128xf32>,
    return
  }
  func.func @transform_0(%arg0: i32) -> (i32, i32) {
    %c0_i32 = arith.constant 0 : i32
    %c0_i32_0 = arith.constant 0 : i32
    %c0_i32_1 = arith.constant 0 : i32
    return %c0_i32, %c0_i32_0 : i32, i32
  }
  func.func @transform_1(%arg0: i32) -> (i32, i32) {
    %c0_i32 = arith.constant 0 : i32
    %c0_i32_0 = arith.constant 0 : i32
    return %c0_i32, %arg0 : i32, i32
  }
  func.func @transform_2(%arg0: i32) -> (i32, i32) {
    %c0_i32 = arith.constant 0 : i32
    %c0_i32_0 = arith.constant 0 : i32
    %c0_i32_1 = arith.constant 0 : i32
    return %c0_i32, %c0_i32_0 : i32, i32
  }
  func.func @transform_3(%arg0: i32) -> (i32, i32) {
    %c0_i32 = arith.constant 0 : i32
    %c0_i32_0 = arith.constant 0 : i32
    %c0_i32_1 = arith.constant 0 : i32
    return %c0_i32, %c0_i32_0 : i32, i32
  }
  func.func @transform_4(%arg0: i32) -> (i32, i32) {
    %c0_i32 = arith.constant 0 : i32
    %c0_i32_0 = arith.constant 0 : i32
    return %c0_i32, %arg0 : i32, i32
  }
}

module attributes {stable_mosaic.version = 11 : i64} {
  func.func @_mm_bias_prelu_res_kernel(%arg0: i32, %arg1: memref<4x256xbf16, #tpu.memory_space<vmem>>, %arg2: memref<256x128xbf16, #tpu.memory_space<vmem>>, %arg3: memref<4x1xf32, #tpu.memory_space<vmem>>, %arg4: memref<1x1xf32, #tpu.memory_space<smem>>, %arg5: memref<4x128xf32, #tpu.memory_space<vmem>>, %arg6: memref<4x128xf32, #tpu.memory_space<vmem>>) attributes {dimension_semantics = [#tpu.dimension_semantics<parallel>], iteration_bounds = array<i64: 1>, scalar_prefetch = 0 : i64, scratch_operands = 0 : i64, tpu.core_type = #tpu.core_type<tc>, window_params = [{pipeline_mode = #tpu.pipeline_mode<synchronous>, transform_indices = @transform_0, window_bounds = array<i64: 4, 256>}, {transform_indices = @transform_1, window_bounds = array<i64: 256, 128>}, {pipeline_mode = #tpu.pipeline_mode<synchronous>, transform_indices = @transform_2, window_bounds = array<i64: 4, 1>}, {transform_indices = @transform_3, window_bounds = array<i64: 1, 1>}, {transform_indices = @transform_4, window_bounds = array<i64: 4, 128>}, {transform_indices = @transform_5, window_bounds = array<i64: 4, 128>}]} {
    %c0 = arith.constant 0 : index
    %c0_0 = arith.constant 0 : index
    %0 = vector.load %arg1[%c0, %c0_0] : memref<4x256xbf16, #tpu.memory_space<vmem>>, vector<4x256xbf16>
    %c0_1 = arith.constant 0 : index
    %c0_2 = arith.constant 0 : index
    %1 = vector.load %arg2[%c0_1, %c0_2] : memref<256x128xbf16, #tpu.memory_space<vmem>>, vector<256x128xbf16>
    %cst = arith.constant dense<0.000000e+00> : vector<4x128xf32>
    %2 = tpu.matmul %0, %1, %cst {dimension_numbers = #tpu.dot_dimension_numbers<[1], [0], [0], [1], [0, 0, 1, 1], [], []>} : vector<4x256xbf16>, vector<256x128xbf16>, vector<4x128xf32> -> vector<4x128xf32>
    %c0_3 = arith.constant 0 : index
    %c0_4 = arith.constant 0 : index
    %3 = vector.load %arg3[%c0_3, %c0_4] : memref<4x1xf32, #tpu.memory_space<vmem>>, vector<4x1xf32>
    %4 = vector.broadcast %3 : vector<4x1xf32> to vector<4x128xf32>
    %5 = arith.addf %2, %4 : vector<4x128xf32>
    %c0_5 = arith.constant 0 : index
    %c0_6 = arith.constant 0 : index
    %6 = memref.load %arg4[%c0_5, %c0_6] : memref<1x1xf32, #tpu.memory_space<smem>>
    %cst_7 = arith.constant 0.000000e+00 : f32
    %7 = vector.broadcast %cst_7 : f32 to vector<4x128xf32>
    %8 = arith.cmpf oge, %5, %7 : vector<4x128xf32>
    %9 = vector.broadcast %6 : f32 to vector<4x128xf32>
    %10 = arith.mulf %9, %5 : vector<4x128xf32>
    %11 = arith.select %8, %5, %10 : vector<4x128xi1>, vector<4x128xf32>
    %c0_8 = arith.constant 0 : index
    %c0_9 = arith.constant 0 : index
    %12 = vector.load %arg5[%c0_8, %c0_9] : memref<4x128xf32, #tpu.memory_space<vmem>>, vector<4x128xf32>
    %13 = arith.subf %11, %12 : vector<4x128xf32>
    %c0_10 = arith.constant 0 : index
    %c0_11 = arith.constant 0 : index
    %14 = vector.load %arg6[%c0_10, %c0_11] : memref<4x128xf32, #tpu.memory_space<vmem>>, vector<4x128xf32>
    tpu.vector_store %arg6[%c0_10, %c0_11], %13 {strides = array<i32>} : memref<4x128xf32, #tpu.memory_space<vmem>>, vector<4x128xf32>,
    return
  }
  func.func @transform_0(%arg0: i32) -> (i32, i32) {
    %c0_i32 = arith.constant 0 : i32
    %c0_i32_0 = arith.constant 0 : i32
    %c0_i32_1 = arith.constant 0 : i32
    return %c0_i32, %c0_i32_0 : i32, i32
  }
  func.func @transform_1(%arg0: i32) -> (i32, i32) {
    %c0_i32 = arith.constant 0 : i32
    %c0_i32_0 = arith.constant 0 : i32
    return %c0_i32, %arg0 : i32, i32
  }
  func.func @transform_2(%arg0: i32) -> (i32, i32) {
    %c0_i32 = arith.constant 0 : i32
    %c0_i32_0 = arith.constant 0 : i32
    %c0_i32_1 = arith.constant 0 : i32
    return %c0_i32, %c0_i32_0 : i32, i32
  }
  func.func @transform_3(%arg0: i32) -> (i32, i32) {
    %c0_i32 = arith.constant 0 : i32
    %c0_i32_0 = arith.constant 0 : i32
    %c0_i32_1 = arith.constant 0 : i32
    return %c0_i32, %c0_i32_0 : i32, i32
  }
  func.func @transform_4(%arg0: i32) -> (i32, i32) {
    %c0_i32 = arith.constant 0 : i32
    %c0_i32_0 = arith.constant 0 : i32
    return %c0_i32, %arg0 : i32, i32
  }
  func.func @transform_5(%arg0: i32) -> (i32, i32) {
    %c0_i32 = arith.constant 0 : i32
    %c0_i32_0 = arith.constant 0 : i32
    return %c0_i32, %arg0 : i32, i32
  }
}

module attributes {stable_mosaic.version = 11 : i64} {
  func.func @_mm_bias_prelu_res_kernel(%arg0: i32, %arg1: memref<64x128xbf16, #tpu.memory_space<vmem>>, %arg2: memref<128x128xbf16, #tpu.memory_space<vmem>>, %arg3: memref<64x1xf32, #tpu.memory_space<vmem>>, %arg4: memref<1x1xf32, #tpu.memory_space<smem>>, %arg5: memref<64x128xf32, #tpu.memory_space<vmem>>, %arg6: memref<64x128xf32, #tpu.memory_space<vmem>>) attributes {dimension_semantics = [#tpu.dimension_semantics<parallel>], iteration_bounds = array<i64: 1>, scalar_prefetch = 0 : i64, scratch_operands = 0 : i64, tpu.core_type = #tpu.core_type<tc>, window_params = [{pipeline_mode = #tpu.pipeline_mode<synchronous>, transform_indices = @transform_0, window_bounds = array<i64: 64, 128>}, {transform_indices = @transform_1, window_bounds = array<i64: 128, 128>}, {pipeline_mode = #tpu.pipeline_mode<synchronous>, transform_indices = @transform_2, window_bounds = array<i64: 64, 1>}, {transform_indices = @transform_3, window_bounds = array<i64: 1, 1>}, {transform_indices = @transform_4, window_bounds = array<i64: 64, 128>}, {transform_indices = @transform_5, window_bounds = array<i64: 64, 128>}]} {
    %c0 = arith.constant 0 : index
    %c0_0 = arith.constant 0 : index
    %0 = vector.load %arg1[%c0, %c0_0] : memref<64x128xbf16, #tpu.memory_space<vmem>>, vector<64x128xbf16>
    %c0_1 = arith.constant 0 : index
    %c0_2 = arith.constant 0 : index
    %1 = vector.load %arg2[%c0_1, %c0_2] : memref<128x128xbf16, #tpu.memory_space<vmem>>, vector<128x128xbf16>
    %cst = arith.constant dense<0.000000e+00> : vector<64x128xf32>
    %2 = tpu.matmul %0, %1, %cst {dimension_numbers = #tpu.dot_dimension_numbers<[1], [0], [0], [1], [0, 0, 1, 1], [], []>} : vector<64x128xbf16>, vector<128x128xbf16>, vector<64x128xf32> -> vector<64x128xf32>
    %c0_3 = arith.constant 0 : index
    %c0_4 = arith.constant 0 : index
    %3 = vector.load %arg3[%c0_3, %c0_4] : memref<64x1xf32, #tpu.memory_space<vmem>>, vector<64x1xf32>
    %4 = vector.broadcast %3 : vector<64x1xf32> to vector<64x128xf32>
    %5 = arith.addf %2, %4 : vector<64x128xf32>
    %c0_5 = arith.constant 0 : index
    %c0_6 = arith.constant 0 : index
    %6 = memref.load %arg4[%c0_5, %c0_6] : memref<1x1xf32, #tpu.memory_space<smem>>
    %cst_7 = arith.constant 0.000000e+00 : f32
    %7 = vector.broadcast %cst_7 : f32 to vector<64x128xf32>
    %8 = arith.cmpf oge, %5, %7 : vector<64x128xf32>
    %9 = vector.broadcast %6 : f32 to vector<64x128xf32>
    %10 = arith.mulf %9, %5 : vector<64x128xf32>
    %11 = arith.select %8, %5, %10 : vector<64x128xi1>, vector<64x128xf32>
    %c0_8 = arith.constant 0 : index
    %c0_9 = arith.constant 0 : index
    %12 = vector.load %arg5[%c0_8, %c0_9] : memref<64x128xf32, #tpu.memory_space<vmem>>, vector<64x128xf32>
    %13 = arith.addf %11, %12 : vector<64x128xf32>
    %c0_10 = arith.constant 0 : index
    %c0_11 = arith.constant 0 : index
    %14 = vector.load %arg6[%c0_10, %c0_11] : memref<64x128xf32, #tpu.memory_space<vmem>>, vector<64x128xf32>
    tpu.vector_store %arg6[%c0_10, %c0_11], %13 {strides = array<i32>} : memref<64x128xf32, #tpu.memory_space<vmem>>, vector<64x128xf32>,
    return
  }
  func.func @transform_0(%arg0: i32) -> (i32, i32) {
    %c0_i32 = arith.constant 0 : i32
    %c0_i32_0 = arith.constant 0 : i32
    %c0_i32_1 = arith.constant 0 : i32
    return %c0_i32, %c0_i32_0 : i32, i32
  }
  func.func @transform_1(%arg0: i32) -> (i32, i32) {
    %c0_i32 = arith.constant 0 : i32
    %c0_i32_0 = arith.constant 0 : i32
    return %c0_i32, %arg0 : i32, i32
  }
  func.func @transform_2(%arg0: i32) -> (i32, i32) {
    %c0_i32 = arith.constant 0 : i32
    %c0_i32_0 = arith.constant 0 : i32
    %c0_i32_1 = arith.constant 0 : i32
    return %c0_i32, %c0_i32_0 : i32, i32
  }
  func.func @transform_3(%arg0: i32) -> (i32, i32) {
    %c0_i32 = arith.constant 0 : i32
    %c0_i32_0 = arith.constant 0 : i32
    %c0_i32_1 = arith.constant 0 : i32
    return %c0_i32, %c0_i32_0 : i32, i32
  }
  func.func @transform_4(%arg0: i32) -> (i32, i32) {
    %c0_i32 = arith.constant 0 : i32
    %c0_i32_0 = arith.constant 0 : i32
    return %c0_i32, %arg0 : i32, i32
  }
  func.func @transform_5(%arg0: i32) -> (i32, i32) {
    %c0_i32 = arith.constant 0 : i32
    %c0_i32_0 = arith.constant 0 : i32
    return %c0_i32, %arg0 : i32, i32
  }
}

</mosaic_0001>

<bundles_post_ra>
// kernel: tile.13
= control target key start
LH: loop header
LB: loop body
LE: loop exit
PB: predicated region body
PF: predicated region fallthrough
CT: control target
= control target key end

     0   :  { %s28_s0 = inlined_call_operand.vmem [shape: f32[4], index: 0, kind: input, shape index: {}]   ;;  %s29_s1 = inlined_call_operand.vmem [shape: f32[16,4], index: 1, kind: output, shape index: {}]  }
   0x1   :  { %v4_v0 = vld [vmem:[%s28_s0] ss:$0 sm:$0xff] }
   0x2   :  { %5 = vst [vmem:[%s29_s1] sm:$0xff] %v4_v0  ;;  %8 = vst [vmem:[%s29_s1 + $0x8] sm:$0xff] %v4_v0 }

// kernel: tile.0
= control target key start
LH: loop header
LB: loop body
LE: loop exit
PB: predicated region body
PF: predicated region fallthrough
CT: control target
= control target key end

     0   :  { %vm3_vm0 = vcmask 7168   ;;  %s64_s10 = smov 127   ;;  %s65_s15 = smov 125   ;;  %s114_s0 = inlined_call_operand.vmem [shape: f32[16,4], index: 0, kind: input, shape index: {}]   ;;  %s115_s1 = inlined_call_operand.vmem [shape: f32[64,1], index: 1, kind: output, shape index: {}]  }
   0x1   :  { %v23_v0 = vld [vmem:[%s114_s0] sm:$0xff]   ;;  %v49_v1 = vld [vmem:[%s114_s0 + $0x8] sm:$0xff]   ;;  %s63_s0 = smov 126  }
   0x2   :  { %24 = vrot.lane.b32.xlu1 %v23_v0, %s63_s0  ;;  %11 = vrot.lane.b32.xlu0 %v23_v0, %s64_s10  ;;  %4 = vst.msk [vmem:[%s115_s1] ss:$4 sm:$0xff] %vm3_vm0, %v23_v0   ;;  %50 = vst.msk [vmem:[%s115_s1 + $0x20] ss:$4 sm:$0xff] %vm3_vm0, %v49_v1  }
   0x6   :  { %31 = vrot.lane.b32.xlu1 %v49_v1, %s63_s0  ;;  %18 = vrot.lane.b32.xlu0 %v49_v1, %s64_s10 }
   0xa   :  { %44 = vrot.lane.b32.xlu1 %v49_v1, %s65_s15  ;;  %37 = vrot.lane.b32.xlu0 %v23_v0, %s65_s15 }
  0x74   :  { %v25_v2 = vpop.permute.xlu1 %24   ;;  %v12_v3 = vpop.permute.xlu0 %11  }
  0x75   :  { %54 = vst.msk [vmem:[%s115_s1 + $0x2] ss:$4 sm:$0xff] %vm3_vm0, %v25_v2   ;;  %51 = vst.msk [vmem:[%s115_s1 + $0x1] ss:$4 sm:$0xff] %vm3_vm0, %v12_v3  }
  0x78   :  { %v32_v4 = vpop.permute.xlu1 %31   ;;  %v19_v5 = vpop.permute.xlu0 %18  }
  0x79   :  { %56 = vst.msk [vmem:[%s115_s1 + $0x22] ss:$4 sm:$0xff] %vm3_vm0, %v32_v4   ;;  %53 = vst.msk [vmem:[%s115_s1 + $0x21] ss:$4 sm:$0xff] %vm3_vm0, %v19_v5  }
  0x7c   :  { %v45_v6 = vpop.permute.xlu1 %44   ;;  %v38_v7 = vpop.permute.xlu0 %37  }
  0x7d   :  { %59 = vst.msk [vmem:[%s115_s1 + $0x23] ss:$4 sm:$0xff] %vm3_vm0, %v45_v6   ;;  %57 = vst.msk [vmem:[%s115_s1 + $0x3] ss:$4 sm:$0xff] %vm3_vm0, %v38_v7  }

// kernel: up_block.3
= control target key start
LH: loop header
LB: loop body
LE: loop exit
PB: predicated region body
PF: predicated region fallthrough
CT: control target
= control target key end

     0   :  { %v345_v1 = vmov 0   ;;  %s458_s1 = inlined_call_operand.vmem [shape: bf16[128,128], index: 1, kind: input, shape index: {}]   ;;  %s459_s0 = inlined_call_operand.vmem [shape: bf16[64,128], index: 0, kind: input, shape index: {}]   ;;  %s460_s2 = inlined_call_operand.vmem [shape: f32[64,1], index: 2, kind: input, shape index: {}]   ;;  %s461_s3 = inlined_call_operand.<no memory space> [shape: f32[1,1], index: 3, kind: input, shape index: {}]   ;;  %s462_s4 = inlined_call_operand.vmem [shape: f32[64,128], index: 4, kind: output, shape index: {}]  }
   0x1   :  { %v333_v0 = vld [vmem:[%s458_s1] sm:$0xff]   ;;  %332 = vset.pattern.permute.xlu1 %v345_v1  ;;  %331 = vset.pattern.permute.xlu0 %v345_v1  ;;  %v334_v2 = vld [vmem:[%s458_s1 + $0x8] sm:$0xff]   ;;  %v335_v3 = vld [vmem:[%s458_s1 + $0x10] sm:$0xff]   ;;  %v237_v29 = vstv %s461_s3 }
   0x2   :  { %290 = vmatprep.subr.bf16.mxu0 %v333_v0  ;;  %314 = vmatprep.subr.bf16.mxu1 %v333_v0  ;;  %v336_v4 = vld [vmem:[%s458_s1 + $0x18] sm:$0xff]   ;;  %v341_v5 = vld [vmem:[%s459_s0] sm:$0xff]   ;;  %v342_v6 = vld [vmem:[%s459_s0 + $0x10] sm:$0xff]  }
   0x3   :  { %291 = vmatpush3.bf16.msra.mxu0 %v333_v0  ;;  %322 = vmatpush3.bf16.msra.mxu1 %v333_v0  ;;  %v337_v7 = vld [vmem:[%s458_s1 + $0x20] sm:$0xff]   ;;  %v45_v8 = vld [vmem:[%s460_s2 + $0x10] sm:$0xff]  ;;  %v46_v10 = vld [vmem:[%s460_s2 + $0x18] sm:$0xff] }
   0x4   :  { %292 = vmatprep.subr.bf16.mxu0 %v334_v2  ;;  %315 = vmatprep.subr.bf16.mxu1 %v334_v2  ;;  %v43_v9 = vld [vmem:[%s460_s2] sm:$0xff]  ;;  %v44_v11 = vld [vmem:[%s460_s2 + $0x8] sm:$0xff]  ;;  %v339_v15 = vld [vmem:[%s458_s1 + $0x30] sm:$0xff]  }
   0x5   :  { %306 = vmatprep.mubr.bf16.mxu0 %v341_v5  ;;  %310 = vmatprep.mubr.bf16.mxu1 %v342_v6  ;;  %v338_v12 = vld [vmem:[%s458_s1 + $0x28] sm:$0xff]   ;;  %v47_v14 = vld [vmem:[%s460_s2 + $0x20] sm:$0xff]  ;;  %v50_v16 = vld [vmem:[%s460_s2 + $0x38] sm:$0xff] }
   0x6   :  { %63 = vperm.xlu1 %332, %v45_v8   ;;  %53 = vperm.xlu0 %331, %v43_v9   ;;  %v48_v13 = vld [vmem:[%s460_s2 + $0x28] sm:$0xff]  ;;  %v49_v17 = vld [vmem:[%s460_s2 + $0x30] sm:$0xff]  ;;  %v340_v18 = vld [vmem:[%s458_s1 + $0x38] sm:$0xff]  }
   0x7   :  { %293 = vmatpush3.bf16.msra.mxu0 %v334_v2  ;;  %323 = vmatpush3.bf16.msra.mxu1 %v334_v2  ;;  %v343_v19 = vld [vmem:[%s459_s0 + $0x8] sm:$0xff]   ;;  %v344_v20 = vld [vmem:[%s459_s0 + $0x18] sm:$0xff]  }
   0x8   :  { %294 = vmatprep.subr.bf16.mxu0 %v335_v3  ;;  %316 = vmatprep.subr.bf16.mxu1 %v335_v3 }
   0xa   :  { %68 = vperm.xlu1 %332, %v46_v10   ;;  %58 = vperm.xlu0 %331, %v44_v11  }
   0xb   :  { %295 = vmatpush3.bf16.msra.mxu0 %v335_v3  ;;  %324 = vmatpush3.bf16.msra.mxu1 %v335_v3 }
   0xc   :  { %296 = vmatprep.subr.bf16.mxu0 %v336_v4  ;;  %317 = vmatprep.subr.bf16.mxu1 %v336_v4 }
   0xe   :  { %78 = vperm.xlu1 %332, %v48_v13   ;;  %73 = vperm.xlu0 %331, %v47_v14  }
   0xf   :  { %297 = vmatpush3.bf16.msra.mxu0 %v336_v4  ;;  %325 = vmatpush3.bf16.msra.mxu1 %v336_v4 }
  0x10   :  { %298 = vmatprep.subr.bf16.mxu0 %v337_v7  ;;  %318 = vmatprep.subr.bf16.mxu1 %v337_v7 }
  0x12   :  { %88 = vperm.xlu1 %332, %v50_v16   ;;  %83 = vperm.xlu0 %331, %v49_v17  }
  0x13   :  { %299 = vmatpush3.bf16.msra.mxu0 %v337_v7  ;;  %326 = vmatpush3.bf16.msra.mxu1 %v337_v7 }
  0x14   :  { %300 = vmatprep.subr.bf16.mxu0 %v338_v12  ;;  %319 = vmatprep.subr.bf16.mxu1 %v338_v12 }
  0x17   :  { %301 = vmatpush3.bf16.msra.mxu0 %v338_v12  ;;  %327 = vmatpush3.bf16.msra.mxu1 %v338_v12 }
  0x18   :  { %302 = vmatprep.subr.bf16.mxu0 %v339_v15  ;;  %320 = vmatprep.subr.bf16.mxu1 %v339_v15 }
  0x1b   :  { %303 = vmatpush3.bf16.msra.mxu0 %v339_v15  ;;  %328 = vmatpush3.bf16.msra.mxu1 %v339_v15 }
  0x1c   :  { %304 = vmatprep.subr.bf16.mxu0 %v340_v18  ;;  %321 = vmatprep.subr.bf16.mxu1 %v340_v18 }
  0x1f   :  { %305 = vmatpush3.bf16.msra.mxu0 %v340_v18  ;;  %329 = vmatpush3.bf16.msra.mxu1 %v340_v18 }
  0x22   :  { %307 = vmatmul.mubr.bf16.vlgmr.msra.gmra.mrb[0].mxu0 %v343_v19  ;;  %311 = vmatmul.mubr.bf16.vlgmr.msra.gmra.mrb[0].mxu1 %v344_v20 }
  0x85   :  { %v54_v21 = vpop.permute.xlu0 %53  ;;  %v64_v22 = vpop.permute.xlu1 %63 }
  0x89   :  { %v59_v23 = vpop.permute.xlu0 %58  ;;  %v69_v24 = vpop.permute.xlu1 %68 }
  0x8d   :  { %v74_v25 = vpop.permute.xlu0 %73  ;;  %v79_v26 = vpop.permute.xlu1 %78 }
  0x91   :  { %v84_v27 = vpop.permute.xlu0 %83  ;;  %v89_v43 = vpop.permute.xlu1 %88 }
  0xf5   :  { %v308_v28 = vpop.f32.mrb[0].mxu0  ;;  %v312_v30 = vpop.f32.mrb[0].mxu1 }
  0xf6   :  { %v206_v31 = vadd.f32 %v308_v28, %v64_v22  ;;  %v222_v32 = vadd.f32 %v312_v30, %v84_v27  ;;  %v197_v33 = vpop.f32.mrb[1].mxu0  ;;  %v213_v34 = vpop.f32.mrb[1].mxu1 }
  0xf7   :  { %v198_v35 = vadd.f32 %v197_v33, %v54_v21  ;;  %v214_v36 = vadd.f32 %v213_v34, %v74_v25  ;;  %v309_v37 = vpop.f32.mrb[2].mxu0  ;;  %v313_v38 = vpop.f32.mrb[2].mxu1 }
  0xf8   :  { %vm231_vm0 = vcmp.ge.f32.partialorder %v206_v31, 0.0  ;;  %v240_v39 = vmul.f32 %v237_v29, %v206_v31  ;;  %vm235_vm1 = vcmp.ge.f32.partialorder %v222_v32, 0.0  ;;  %v244_v40 = vmul.f32 %v237_v29, %v222_v32  ;;  %v200_v41 = vpop.f32.mrb[3].mxu0  ;;  %v216_v42 = vpop.f32.mrb[3].mxu1 }
  0xf9   :  { %vm229_vm2 = vcmp.ge.f32.partialorder %v198_v35, 0.0  ;;  %v238_v44 = vmul.f32 %v237_v29, %v198_v35  ;;  %vm233_vm3 = vcmp.ge.f32.partialorder %v214_v36, 0.0  ;;  %v242_v45 = vmul.f32 %v237_v29, %v214_v36 }
  0xfa   :  { %v248_v46 = vsel %vm231_vm0, %v206_v31, %v240_v39  ;;  %v252_v47 = vsel %vm235_vm1, %v222_v32, %v244_v40  ;;  %v209_v48 = vadd.f32 %v309_v37, %v69_v24  ;;  %v225_v49 = vadd.f32 %v313_v38, %v89_v43 }
  0xfb   :  { %256 = vst [vmem:[%s462_s4 + $0x10] sm:$0xff] %v248_v46  ;;  %260 = vst [vmem:[%s462_s4 + $0x30] sm:$0xff] %v252_v47  ;;  %v246_v50 = vsel %vm229_vm2, %v198_v35, %v238_v44  ;;  %v250_v51 = vsel %vm233_vm3, %v214_v36, %v242_v45  ;;  %v201_v52 = vadd.f32 %v200_v41, %v59_v23 }
  0xfc   :  { %v217_v53 = vadd.f32 %v216_v42, %v79_v26  ;;  %254 = vst [vmem:[%s462_s4] sm:$0xff] %v246_v50  ;;  %258 = vst [vmem:[%s462_s4 + $0x20] sm:$0xff] %v250_v51  ;;  %vm232_vm4 = vcmp.ge.f32.partialorder %v209_v48, 0.0  ;;  %v241_v54 = vmul.f32 %v237_v29, %v209_v48  ;;  %vm236_vm5 = vcmp.ge.f32.partialorder %v225_v49, 0.0 }
  0xfd   :  { %v245_v55 = vmul.f32 %v237_v29, %v225_v49  ;;  %vm230_vm6 = vcmp.ge.f32.partialorder %v201_v52, 0.0  ;;  %v239_v56 = vmul.f32 %v237_v29, %v201_v52 }
  0xfe   :  { %vm234_vm7 = vcmp.ge.f32.partialorder %v217_v53, 0.0  ;;  %v243_v57 = vmul.f32 %v237_v29, %v217_v53  ;;  %v249_v58 = vsel %vm232_vm4, %v209_v48, %v241_v54 }
  0xff   :  { %v253_v59 = vsel %vm236_vm5, %v225_v49, %v245_v55  ;;  %257 = vst [vmem:[%s462_s4 + $0x18] sm:$0xff] %v249_v58  ;;  %v247_v60 = vsel %vm230_vm6, %v201_v52, %v239_v56 }
 0x100   :  { %261 = vst [vmem:[%s462_s4 + $0x38] sm:$0xff] %v253_v59  ;;  %v251_v61 = vsel %vm234_vm7, %v217_v53, %v243_v57  ;;  %255 = vst [vmem:[%s462_s4 + $0x8] sm:$0xff] %v247_v60 }
 0x101   :  { %259 = vst [vmem:[%s462_s4 + $0x28] sm:$0xff] %v251_v61 }

// kernel: up_block.4
= control target key start
LH: loop header
LB: loop body
LE: loop exit
PB: predicated region body
PF: predicated region fallthrough
CT: control target
= control target key end

     0   :  { %v277_v1 = vmov 0   ;;  %s371_s1 = inlined_call_operand.vmem [shape: bf16[256,128], index: 1, kind: input, shape index: {}]   ;;  %s372_s0 = inlined_call_operand.vmem [shape: bf16[4,256], index: 0, kind: input, shape index: {}]   ;;  %s373_s2 = inlined_call_operand.vmem [shape: f32[4,1], index: 2, kind: input, shape index: {}]   ;;  %s374_s3 = inlined_call_operand.<no memory space> [shape: f32[1,1], index: 3, kind: input, shape index: {}]   ;;  %s375_s4 = inlined_call_operand.vmem [shape: f32[4,128], index: 4, kind: input, shape index: {}]   ;;  %s376_s5 = inlined_call_operand.vmem [shape: f32[4,128], index: 5, kind: output, shape index: {}]  }
   0x1   :  { %v261_v0 = vld [vmem:[%s371_s1 + $0x40] sm:$0xff]   ;;  %260 = vset.pattern.permute.xlu0 %v277_v1  ;;  %v263_v3 = vld [vmem:[%s371_s1 + $0x48] sm:$0xff]   ;;  %v265_v5 = vld [vmem:[%s371_s1 + $0x50] sm:$0xff]   ;;  %v210_v25 = vstv %s374_s3 }
   0x2   :  { %v262_v2 = vld [vmem:[%s371_s1] sm:$0xff]   ;;  %237 = vmatprep.subr.bf16.mxu0 %v261_v0  ;;  %v264_v4 = vld [vmem:[%s371_s1 + $0x8] sm:$0xff]   ;;  %v266_v6 = vld [vmem:[%s371_s1 + $0x10] sm:$0xff]  }
   0x3   :  { %238 = vmatpush3.bf16.msra.mxu0 %v262_v2  ;;  %v267_v7 = vld [vmem:[%s371_s1 + $0x58] sm:$0xff]   ;;  %v269_v9 = vld [vmem:[%s371_s1 + $0x60] sm:$0xff]   ;;  %v271_v11 = vld [vmem:[%s371_s1 + $0x68] sm:$0xff]  }
   0x4   :  { %239 = vmatprep.subr.bf16.mxu0 %v263_v3  ;;  %v268_v8 = vld [vmem:[%s371_s1 + $0x18] sm:$0xff]   ;;  %v270_v10 = vld [vmem:[%s371_s1 + $0x20] sm:$0xff]   ;;  %v272_v15 = vld [vmem:[%s371_s1 + $0x28] sm:$0xff]  }
   0x5   :  { %v220_v12 = vld.sshfl [vmem:[%s372_s0] sm:$0x33 pattern:$0x76325410]  ;;  %v273_v16 = vld [vmem:[%s371_s1 + $0x70] sm:$0xff]   ;;  %v275_v18 = vld [vmem:[%s371_s1 + $0x78] sm:$0xff]  }
   0x6   :  { %v55_v13 = vld [vmem:[%s373_s2] sm:$0xf]  ;;  %v69_v14 = vcombine.high %v220_v12, %v220_v12  ;;  %v274_v17 = vld [vmem:[%s371_s1 + $0x30] sm:$0xff]   ;;  %v276_v19 = vld [vmem:[%s371_s1 + $0x38] sm:$0xff]  }
   0x7   :  { %240 = vmatpush3.bf16.msra.mxu0 %v264_v4  ;;  %58 = vperm.xlu0 %260, %v55_v13   ;;  %v213_v28 = vld [vmem:[%s375_s4] sm:$0xf] }
   0x8   :  { %241 = vmatprep.subr.bf16.mxu0 %v265_v5  ;;  %200 = vmatprep.mubr.bf16.mxu0 %v69_v14 }
   0xb   :  { %242 = vmatpush3.bf16.msra.mxu0 %v266_v6 }
   0xc   :  { %243 = vmatprep.subr.bf16.mxu0 %v267_v7 }
   0xf   :  { %244 = vmatpush3.bf16.msra.mxu0 %v268_v8 }
  0x10   :  { %245 = vmatprep.subr.bf16.mxu0 %v269_v9 }
  0x13   :  { %246 = vmatpush3.bf16.msra.mxu0 %v270_v10 }
  0x14   :  { %247 = vmatprep.subr.bf16.mxu0 %v271_v11 }
  0x17   :  { %248 = vmatpush3.bf16.msra.mxu0 %v272_v15 }
  0x18   :  { %249 = vmatprep.subr.bf16.mxu0 %v273_v16 }
  0x1b   :  { %250 = vmatpush3.bf16.msra.mxu0 %v274_v17 }
  0x1c   :  { %251 = vmatprep.subr.bf16.mxu0 %v275_v18 }
  0x1f   :  { %252 = vmatpush3.bf16.msra.mxu0 %v276_v19 }
  0x22   :  { %201 = vmatmul.mubr.bf16.vlgmr.msra.gmra.mrb[0].mxu0 %v220_v12 }
  0x86   :  { %v59_v22 = vpop.permute.xlu0 %58 }
  0xf5   :  { %v253_v20 = vpop.f32.mrb[0].mxu0 }
  0xf6   :  { %v254_v21 = vpop.f32.mrb[1].mxu0 }
  0xf7   :  { %v255_v23 = vadd.f32 %v254_v21, %v253_v20  ;;  %v256_v24 = vpop.f32.mrb[2].mxu0 }
  0xf8   :  { %v257_v26 = vpop.f32.mrb[3].mxu0 }
  0xf9   :  { %v203_v27 = vadd.f32 %v255_v23, %v59_v22 }
  0xfb   :  { %vm209_vm0 = vcmp.ge.f32.partialorder %v203_v27, 0.0  ;;  %v211_v29 = vmul.f32 %v210_v25, %v203_v27 }
  0xfd   :  { %v212_v30 = vsel %vm209_vm0, %v203_v27, %v211_v29 }
  0xfe   :  { %v214_v31 = vsub.f32 %v212_v30, %v213_v28 }
 0x100   :  { %215 = vst [vmem:[%s376_s5] sm:$0xf] %v214_v31 }

// kernel: up_block.5
= control target key start
LH: loop header
LB: loop body
LE: loop exit
PB: predicated region body
PF: predicated region fallthrough
CT: control target
= control target key end

     0   :  { %v364_v1 = vmov 0   ;;  %s507_s1 = inlined_call_operand.vmem [shape: bf16[128,128], index: 1, kind: input, shape index: {}]   ;;  %s508_s0 = inlined_call_operand.vmem [shape: bf16[64,128], index: 0, kind: input, shape index: {}]   ;;  %s509_s2 = inlined_call_operand.vmem [shape: f32[64,1], index: 2, kind: input, shape index: {}]   ;;  %s510_s3 = inlined_call_operand.<no memory space> [shape: f32[1,1], index: 3, kind: input, shape index: {}]   ;;  %s511_s4 = inlined_call_operand.vmem [shape: f32[64,128], index: 4, kind: input, shape index: {}]   ;;  %s512_s5 = inlined_call_operand.vmem [shape: f32[64,128], index: 5, kind: output, shape index: {}]  }
   0x1   :  { %v352_v0 = vld [vmem:[%s507_s1] sm:$0xff]   ;;  %351 = vset.pattern.permute.xlu1 %v364_v1  ;;  %350 = vset.pattern.permute.xlu0 %v364_v1  ;;  %v353_v2 = vld [vmem:[%s507_s1 + $0x8] sm:$0xff]   ;;  %v354_v3 = vld [vmem:[%s507_s1 + $0x10] sm:$0xff]   ;;  %v240_v29 = vstv %s510_s3 }
   0x2   :  { %309 = vmatprep.subr.bf16.mxu0 %v352_v0  ;;  %333 = vmatprep.subr.bf16.mxu1 %v352_v0  ;;  %v355_v4 = vld [vmem:[%s507_s1 + $0x18] sm:$0xff]   ;;  %v360_v5 = vld [vmem:[%s508_s0] sm:$0xff]   ;;  %v361_v6 = vld [vmem:[%s508_s0 + $0x10] sm:$0xff]  }
   0x3   :  { %310 = vmatpush3.bf16.msra.mxu0 %v352_v0  ;;  %341 = vmatpush3.bf16.msra.mxu1 %v352_v0  ;;  %v356_v7 = vld [vmem:[%s507_s1 + $0x20] sm:$0xff]   ;;  %v48_v8 = vld [vmem:[%s509_s2 + $0x10] sm:$0xff]  ;;  %v49_v10 = vld [vmem:[%s509_s2 + $0x18] sm:$0xff] }
   0x4   :  { %311 = vmatprep.subr.bf16.mxu0 %v353_v2  ;;  %334 = vmatprep.subr.bf16.mxu1 %v353_v2  ;;  %v46_v9 = vld [vmem:[%s509_s2] sm:$0xff]  ;;  %v47_v11 = vld [vmem:[%s509_s2 + $0x8] sm:$0xff]  ;;  %v358_v15 = vld [vmem:[%s507_s1 + $0x30] sm:$0xff]  }
   0x5   :  { %325 = vmatprep.mubr.bf16.mxu0 %v360_v5  ;;  %329 = vmatprep.mubr.bf16.mxu1 %v361_v6  ;;  %v357_v12 = vld [vmem:[%s507_s1 + $0x28] sm:$0xff]   ;;  %v50_v14 = vld [vmem:[%s509_s2 + $0x20] sm:$0xff]  ;;  %v53_v16 = vld [vmem:[%s509_s2 + $0x38] sm:$0xff] }
   0x6   :  { %66 = vperm.xlu1 %351, %v48_v8   ;;  %56 = vperm.xlu0 %350, %v46_v9   ;;  %v51_v13 = vld [vmem:[%s509_s2 + $0x28] sm:$0xff]  ;;  %v52_v17 = vld [vmem:[%s509_s2 + $0x30] sm:$0xff]  ;;  %v359_v18 = vld [vmem:[%s507_s1 + $0x38] sm:$0xff]  }
   0x7   :  { %312 = vmatpush3.bf16.msra.mxu0 %v353_v2  ;;  %342 = vmatpush3.bf16.msra.mxu1 %v353_v2  ;;  %v362_v19 = vld [vmem:[%s508_s0 + $0x8] sm:$0xff]   ;;  %v363_v20 = vld [vmem:[%s508_s0 + $0x18] sm:$0xff]   ;;  %v259_v40 = vld [vmem:[%s511_s4 + $0x10] sm:$0xff] }
   0x8   :  { %313 = vmatprep.subr.bf16.mxu0 %v354_v3  ;;  %335 = vmatprep.subr.bf16.mxu1 %v354_v3  ;;  %v263_v42 = vld [vmem:[%s511_s4 + $0x30] sm:$0xff]  ;;  %v257_v47 = vld [vmem:[%s511_s4] sm:$0xff]  ;;  %v260_v61 = vld [vmem:[%s511_s4 + $0x18] sm:$0xff] }
   0x9   :  { %v261_v49 = vld [vmem:[%s511_s4 + $0x20] sm:$0xff]  ;;  %v264_v63 = vld [vmem:[%s511_s4 + $0x38] sm:$0xff]  ;;  %v258_v6 = vld [vmem:[%s511_s4 + $0x8] sm:$0xff] }
   0xa   :  { %71 = vperm.xlu1 %351, %v49_v10   ;;  %61 = vperm.xlu0 %350, %v47_v11   ;;  %v262_v9 = vld [vmem:[%s511_s4 + $0x28] sm:$0xff] }
   0xb   :  { %314 = vmatpush3.bf16.msra.mxu0 %v354_v3  ;;  %343 = vmatpush3.bf16.msra.mxu1 %v354_v3 }
   0xc   :  { %315 = vmatprep.subr.bf16.mxu0 %v355_v4  ;;  %336 = vmatprep.subr.bf16.mxu1 %v355_v4 }
   0xe   :  { %81 = vperm.xlu1 %351, %v51_v13   ;;  %76 = vperm.xlu0 %350, %v50_v14  }
   0xf   :  { %316 = vmatpush3.bf16.msra.mxu0 %v355_v4  ;;  %344 = vmatpush3.bf16.msra.mxu1 %v355_v4 }
  0x10   :  { %317 = vmatprep.subr.bf16.mxu0 %v356_v7  ;;  %337 = vmatprep.subr.bf16.mxu1 %v356_v7 }
  0x12   :  { %91 = vperm.xlu1 %351, %v53_v16   ;;  %86 = vperm.xlu0 %350, %v52_v17  }
  0x13   :  { %318 = vmatpush3.bf16.msra.mxu0 %v356_v7  ;;  %345 = vmatpush3.bf16.msra.mxu1 %v356_v7 }
  0x14   :  { %319 = vmatprep.subr.bf16.mxu0 %v357_v12  ;;  %338 = vmatprep.subr.bf16.mxu1 %v357_v12 }
  0x17   :  { %320 = vmatpush3.bf16.msra.mxu0 %v357_v12  ;;  %346 = vmatpush3.bf16.msra.mxu1 %v357_v12 }
  0x18   :  { %321 = vmatprep.subr.bf16.mxu0 %v358_v15  ;;  %339 = vmatprep.subr.bf16.mxu1 %v358_v15 }
  0x1b   :  { %322 = vmatpush3.bf16.msra.mxu0 %v358_v15  ;;  %347 = vmatpush3.bf16.msra.mxu1 %v358_v15 }
  0x1c   :  { %323 = vmatprep.subr.bf16.mxu0 %v359_v18  ;;  %340 = vmatprep.subr.bf16.mxu1 %v359_v18 }
  0x1f   :  { %324 = vmatpush3.bf16.msra.mxu0 %v359_v18  ;;  %348 = vmatpush3.bf16.msra.mxu1 %v359_v18 }
  0x22   :  { %326 = vmatmul.mubr.bf16.vlgmr.msra.gmra.mrb[0].mxu0 %v362_v19  ;;  %330 = vmatmul.mubr.bf16.vlgmr.msra.gmra.mrb[0].mxu1 %v363_v20 }
  0x85   :  { %v57_v21 = vpop.permute.xlu0 %56  ;;  %v67_v22 = vpop.permute.xlu1 %66 }
  0x89   :  { %v62_v23 = vpop.permute.xlu0 %61  ;;  %v72_v24 = vpop.permute.xlu1 %71 }
  0x8d   :  { %v77_v25 = vpop.permute.xlu0 %76  ;;  %v82_v26 = vpop.permute.xlu1 %81 }
  0x91   :  { %v87_v27 = vpop.permute.xlu0 %86  ;;  %v92_v45 = vpop.permute.xlu1 %91 }
  0xf5   :  { %v327_v28 = vpop.f32.mrb[0].mxu0  ;;  %v331_v30 = vpop.f32.mrb[0].mxu1 }
  0xf6   :  { %v209_v31 = vadd.f32 %v327_v28, %v67_v22  ;;  %v225_v32 = vadd.f32 %v331_v30, %v87_v27  ;;  %v200_v33 = vpop.f32.mrb[1].mxu0  ;;  %v216_v34 = vpop.f32.mrb[1].mxu1 }
  0xf7   :  { %v201_v35 = vadd.f32 %v200_v33, %v57_v21  ;;  %v217_v36 = vadd.f32 %v216_v34, %v77_v25  ;;  %v328_v37 = vpop.f32.mrb[2].mxu0  ;;  %v332_v38 = vpop.f32.mrb[2].mxu1 }
  0xf8   :  { %vm234_vm0 = vcmp.ge.f32.partialorder %v209_v31, 0.0  ;;  %v243_v39 = vmul.f32 %v240_v29, %v209_v31  ;;  %vm238_vm1 = vcmp.ge.f32.partialorder %v225_v32, 0.0  ;;  %v247_v41 = vmul.f32 %v240_v29, %v225_v32  ;;  %v203_v43 = vpop.f32.mrb[3].mxu0  ;;  %v219_v44 = vpop.f32.mrb[3].mxu1 }
  0xf9   :  { %vm232_vm2 = vcmp.ge.f32.partialorder %v201_v35, 0.0  ;;  %v241_v46 = vmul.f32 %v240_v29, %v201_v35  ;;  %vm236_vm3 = vcmp.ge.f32.partialorder %v217_v36, 0.0  ;;  %v245_v48 = vmul.f32 %v240_v29, %v217_v36 }
  0xfa   :  { %v251_v50 = vsel %vm234_vm0, %v209_v31, %v243_v39  ;;  %v255_v51 = vsel %vm238_vm1, %v225_v32, %v247_v41  ;;  %v212_v52 = vadd.f32 %v328_v37, %v72_v24  ;;  %v228_v53 = vadd.f32 %v332_v38, %v92_v45 }
  0xfb   :  { %v267_v54 = vadd.f32 %v259_v40, %v251_v50  ;;  %v271_v55 = vadd.f32 %v263_v42, %v255_v51  ;;  %v249_v56 = vsel %vm232_vm2, %v201_v35, %v241_v46  ;;  %v253_v57 = vsel %vm236_vm3, %v217_v36, %v245_v48 }
  0xfc   :  { %v265_v58 = vadd.f32 %v257_v47, %v249_v56  ;;  %v269_v59 = vadd.f32 %v261_v49, %v253_v57  ;;  %vm235_vm4 = vcmp.ge.f32.partialorder %v212_v52, 0.0  ;;  %v244_v60 = vmul.f32 %v240_v29, %v212_v52 }
  0xfd   :  { %275 = vst [vmem:[%s512_s5 + $0x10] sm:$0xff] %v267_v54  ;;  %279 = vst [vmem:[%s512_s5 + $0x30] sm:$0xff] %v271_v55  ;;  %vm239_vm5 = vcmp.ge.f32.partialorder %v228_v53, 0.0  ;;  %v248_v62 = vmul.f32 %v240_v29, %v228_v53  ;;  %v204_v0 = vadd.f32 %v203_v43, %v62_v23  ;;  %v220_v1 = vadd.f32 %v219_v44, %v82_v26 }
  0xfe   :  { %273 = vst [vmem:[%s512_s5] sm:$0xff] %v265_v58  ;;  %277 = vst [vmem:[%s512_s5 + $0x20] sm:$0xff] %v269_v59  ;;  %v252_v2 = vsel %vm235_vm4, %v212_v52, %v244_v60 }
  0xff   :  { %v268_v3 = vadd.f32 %v260_v61, %v252_v2  ;;  %v256_v4 = vsel %vm239_vm5, %v228_v53, %v248_v62  ;;  %vm233_vm6 = vcmp.ge.f32.partialorder %v204_v0, 0.0  ;;  %v242_v5 = vmul.f32 %v240_v29, %v204_v0 }
 0x100   :  { %v272_v7 = vadd.f32 %v264_v63, %v256_v4  ;;  %vm237_vm7 = vcmp.ge.f32.partialorder %v220_v1, 0.0  ;;  %v246_v8 = vmul.f32 %v240_v29, %v220_v1 }
 0x101   :  { %276 = vst [vmem:[%s512_s5 + $0x18] sm:$0xff] %v268_v3  ;;  %v250_v10 = vsel %vm233_vm6, %v204_v0, %v242_v5 }
 0x102   :  { %280 = vst [vmem:[%s512_s5 + $0x38] sm:$0xff] %v272_v7  ;;  %v266_v11 = vadd.f32 %v258_v6, %v250_v10  ;;  %v254_v12 = vsel %vm237_vm7, %v220_v1, %v246_v8 }
 0x103   :  { %v270_v13 = vadd.f32 %v262_v9, %v254_v12 }
 0x104   :  { %274 = vst [vmem:[%s512_s5 + $0x8] sm:$0xff] %v266_v11 }
 0x105   :  { %278 = vst [vmem:[%s512_s5 + $0x28] sm:$0xff] %v270_v13 }

</bundles_post_ra>
